<compile_context>
chip_gen: v5e
topology: v5e:2x2
jax: 0.10.0
libtpu: 0.0.40
codegen_flags: <defaults>
</compile_context>

<pallas_src>
import functools

import jax
import jax.numpy as jnp
from jax.experimental import pallas as pl
from jax.experimental.pallas import tpu as pltpu

LANE = 128
SUB = 8
_NCORES = 2            # leading 'parallel' grid axis -> megacore split on v7x
_DEF_TILE_ROWS = 2048  # tile = tile_rows x 128 elements


def _huber_elem(err_f32, delta):
    abs_e = jnp.abs(err_f32)
    small = abs_e < delta
    return jnp.where(small, 0.5 * err_f32 * err_f32,
                     delta * abs_e - 0.5 * delta * delta)


def _huber_reduce_kernel(x_ref, t_ref, o_ref, *, delta, n, tile_rows,
                         steps_per_core, grid_rows):
    """Accumulates per-(sublane, lane) partial sums into o_ref (1, 8, 128)."""
    c = pl.program_id(0)          # 'parallel' core-split axis
    i = pl.program_id(1)          # 'arbitrary' reduction axis

    @pl.when(i == 0)
    def _():
        o_ref[...] = jnp.zeros_like(o_ref)

    err = t_ref[...].astype(jnp.float32) - x_ref[...].astype(jnp.float32)
    loss = _huber_elem(err, jnp.float32(delta))

    logical = c * steps_per_core + i        # un-clamped logical block index
    is_tail = logical >= grid_rows - 1      # last real block or beyond it

    def _accum(vals):
        # VPU-only vertical add into (8,128) lane partials; no per-step XLU.
        o_ref[...] += vals.reshape(-1, SUB, LANE).sum(axis=0, keepdims=True)

    @pl.when(jnp.logical_not(is_tail))
    def _():
        _accum(loss)

    @pl.when(is_tail)
    def _():
        # Mask out elements past the true element count n. Covers ragged
        # tails, partial-block padding, and clamped out-of-range blocks.
        full_rows = pl.cdiv(n, LANE)                 # static python ints
        last_len = n - (full_rows - 1) * LANE
        row_g = logical * tile_rows + jax.lax.broadcasted_iota(
            jnp.int32, loss.shape, 0)
        lane = jax.lax.broadcasted_iota(jnp.int32, loss.shape, 1)
        valid = (row_g < full_rows - 1) | (
            (row_g == full_rows - 1) & (lane < last_len))
        _accum(jnp.where(valid, loss, 0.0))


def _huber_none_kernel(x_ref, t_ref, o_ref, *, delta):
    err = t_ref[...].astype(jnp.float32) - x_ref[...].astype(jnp.float32)
    o_ref[...] = _huber_elem(err, jnp.float32(delta)).astype(o_ref.dtype)


def _as_slab(a, rows_padded):
    """Flattened (rows_padded, 128) view in native dtype; pads only if ragged."""
    n = a.size
    flat = a.reshape(-1)
    pad = rows_padded * LANE - n
    if pad:  # zero padding: contributes 0 loss / is sliced off afterwards
        flat = jnp.pad(flat, (0, pad))
    return flat.reshape(rows_padded, LANE)


def huber_loss(inputs, targets, delta=1.0, reduction="mean",
               tile_rows=_DEF_TILE_ROWS):
    assert inputs.shape == targets.shape
    orig_shape = inputs.shape
    orig_dtype = inputs.dtype
    n = int(inputs.size)
    itemsize = jnp.dtype(orig_dtype).itemsize

    rows = pl.cdiv(n, LANE)
    rows_padded = pl.cdiv(rows, SUB) * SUB              # multiple of 8 sublanes
    tile_rows = max(SUB, (int(tile_rows) // SUB) * SUB)
    tile_rows = min(tile_rows, rows_padded)             # still a multiple of 8
    grid_rows = pl.cdiv(rows_padded, tile_rows)

    x = _as_slab(inputs, rows_padded)    # native dtype, no f32 upcast
    t = _as_slab(targets, rows_padded)

    if reduction in ("mean", "sum"):
        steps_per_core = pl.cdiv(grid_rows, _NCORES)

        def in_map(c, i):
            # Clamp so the DMA always stays in bounds; out-of-range logical
            # blocks are zeroed by the in-kernel mask.
            return (jnp.minimum(c * steps_per_core + i, grid_rows - 1), 0)

        tile_spec = pl.BlockSpec((tile_rows, LANE), in_map)
        kernel = functools.partial(
            _huber_reduce_kernel, delta=float(delta), n=n, tile_rows=tile_rows,
            steps_per_core=steps_per_core, grid_rows=grid_rows)
        partials = pl.pallas_call(
            kernel,
            out_shape=jax.ShapeDtypeStruct((_NCORES, SUB, LANE), jnp.float32),
            grid_spec=pltpu.PrefetchScalarGridSpec(
                num_scalar_prefetch=0,
                grid=(_NCORES, steps_per_core),
                in_specs=[tile_spec, tile_spec],
                out_specs=pl.BlockSpec((1, SUB, LANE), lambda c, i: (c, 0, 0)),
            ),
            compiler_params=pltpu.CompilerParams(
                dimension_semantics=("parallel", "arbitrary")),
            cost_estimate=pl.CostEstimate(
                flops=8 * n, transcendentals=0,
                bytes_accessed=2 * n * itemsize + _NCORES * SUB * LANE * 4),
        )(x, t)
        total = jnp.sum(partials)        # tiny (2,8,128) f32 reduce in XLA
        if reduction == "mean":
            total = total / jnp.float32(n)
        return total.astype(jnp.float32)
    else:  # 'none' -> elementwise loss with original shape/dtype
        tile_spec = pl.BlockSpec((tile_rows, LANE), lambda i: (i, 0))
        kernel = functools.partial(_huber_none_kernel, delta=float(delta))
        out = pl.pallas_call(
            kernel,
            out_shape=jax.ShapeDtypeStruct((rows_padded, LANE), orig_dtype),
            grid_spec=pltpu.PrefetchScalarGridSpec(
                num_scalar_prefetch=0,
                grid=(grid_rows,),
                in_specs=[tile_spec, tile_spec],
                out_specs=tile_spec,
            ),
            compiler_params=pltpu.CompilerParams(
                dimension_semantics=("parallel",)),
            cost_estimate=pl.CostEstimate(
                flops=8 * n, transcendentals=0,
                bytes_accessed=2 * n * itemsize + n * itemsize),
        )(x, t)
        return out.reshape(-1)[:n].reshape(orig_shape)


if __name__ == "__main__":
    key = jax.random.PRNGKey(0)
    k1, k2, k3, k4 = jax.random.split(key, 4)

    def ref_loss(x, t, delta, reduction):
        err = t - x
        abs_e = jnp.abs(err)
        loss = jnp.where(abs_e < delta, 0.5 * err * err,
                         delta * abs_e - 0.5 * delta * delta)
        if reduction == "mean":
            return loss.mean()
        if reduction == "sum":
            return loss.sum()
        return loss

    delta = 1.0
    shape = (2, 4, 16, 16)  # NCHW, matches the PyTorch usage
    x = jax.random.normal(k1, shape, dtype=jnp.float32)
    t = jax.random.normal(k2, shape, dtype=jnp.float32)

    out_mean = jax.block_until_ready(huber_loss(x, t, delta, "mean"))
    assert jnp.allclose(out_mean, ref_loss(x, t, delta, "mean"),
                        rtol=1e-5, atol=1e-6), out_mean

    out_sum = jax.block_until_ready(huber_loss(x, t, delta, "sum"))
    assert jnp.allclose(out_sum, ref_loss(x, t, delta, "sum"),
                        rtol=1e-5, atol=1e-5), out_sum

    out_none = jax.block_until_ready(huber_loss(x, t, delta, "none"))
    assert jnp.allclose(out_none, ref_loss(x, t, delta, "none"),
                        rtol=1e-5, atol=1e-6)

    # Ragged tail (n not a multiple of 128) exercises the in-kernel mask.
    xr = jax.random.normal(k3, (1000,), dtype=jnp.float32)
    tr = jax.random.normal(k4, (1000,), dtype=jnp.float32)
    out_r = jax.block_until_ready(huber_loss(xr, tr, delta, "mean"))
    assert jnp.allclose(out_r, ref_loss(xr, tr, delta, "mean"),
                        rtol=1e-5, atol=1e-6), out_r
    out_rn = jax.block_until_ready(huber_loss(xr, tr, delta, "none"))
    assert jnp.allclose(out_rn, ref_loss(xr, tr, delta, "none"),
                        rtol=1e-5, atol=1e-6)

    # Multi-block grid (exercises the 2-way core split of the reduction axis).
    out_m = jax.block_until_ready(huber_loss(x, t, delta, "sum", tile_rows=8))
    assert jnp.allclose(out_m, ref_loss(x, t, delta, "sum"),
                        rtol=1e-5, atol=1e-5), out_m

    print("KERNEL_OK")
</pallas_src>

<mosaic_0001>
module attributes {stable_mosaic.version = 11 : i64} {
  func.func @_huber_reduce_kernel(%arg0: i32, %arg1: i32, %arg2: memref<16x128xf32, #tpu.memory_space<vmem>>, %arg3: memref<16x128xf32, #tpu.memory_space<vmem>>, %arg4: memref<1x8x128xf32, #tpu.memory_space<vmem>>) attributes {dimension_semantics = [#tpu.dimension_semantics<parallel>, #tpu.dimension_semantics<arbitrary>], iteration_bounds = array<i64: 2, 1>, scalar_prefetch = 0 : i64, scratch_operands = 0 : i64, tpu.core_type = #tpu.core_type<tc>, window_params = [{transform_indices = @transform_0, window_bounds = array<i64: 16, 128>}, {transform_indices = @transform_1, window_bounds = array<i64: 16, 128>}, {transform_indices = @transform_2, window_bounds = array<i64: 1, 8, 128>}]} {
    %c0_i32 = arith.constant 0 : i32
    %0 = arith.cmpi eq, %arg1, %c0_i32 : i32
    %1 = arith.extui %0 : i1 to i32
    %c0_i32_0 = arith.constant 0 : i32
    %2 = arith.cmpi ne, %1, %c0_i32_0 : i32
    scf.if %2 {
      %cst_12 = arith.constant 0.000000e+00 : f32
      %27 = vector.broadcast %cst_12 : f32 to vector<1x8x128xf32>
      %c0_13 = arith.constant 0 : index
      %c0_14 = arith.constant 0 : index
      %c0_15 = arith.constant 0 : index
      %28 = vector.load %arg4[%c0_13, %c0_14, %c0_15] : memref<1x8x128xf32, #tpu.memory_space<vmem>>, vector<1x8x128xf32>
      tpu.vector_store %arg4[%c0_13, %c0_14, %c0_15], %27 {strides = array<i32>} : memref<1x8x128xf32, #tpu.memory_space<vmem>>, vector<1x8x128xf32>,
    } else {
    }
    %c0 = arith.constant 0 : index
    %c0_1 = arith.constant 0 : index
    %3 = vector.load %arg3[%c0, %c0_1] : memref<16x128xf32, #tpu.memory_space<vmem>>, vector<16x128xf32>
    %c0_2 = arith.constant 0 : index
    %c0_3 = arith.constant 0 : index
    %4 = vector.load %arg2[%c0_2, %c0_3] : memref<16x128xf32, #tpu.memory_space<vmem>>, vector<16x128xf32>
    %5 = arith.subf %3, %4 : vector<16x128xf32>
    %6 = math.absf %5 : vector<16x128xf32>
    %cst = arith.constant 1.000000e+00 : f32
    %7 = vector.broadcast %cst : f32 to vector<16x128xf32>
    %8 = arith.cmpf olt, %6, %7 : vector<16x128xf32>
    %cst_4 = arith.constant 5.000000e-01 : f32
    %9 = vector.broadcast %cst_4 : f32 to vector<16x128xf32>
    %10 = arith.mulf %9, %5 : vector<16x128xf32>
    %11 = arith.mulf %10, %5 : vector<16x128xf32>
    %cst_5 = arith.constant 1.000000e+00 : f32
    %12 = vector.broadcast %cst_5 : f32 to vector<16x128xf32>
    %13 = arith.mulf %12, %6 : vector<16x128xf32>
    %cst_6 = arith.constant 5.000000e-01 : f32
    %cst_7 = arith.constant 1.000000e+00 : f32
    %14 = arith.mulf %cst_6, %cst_7 : f32
    %cst_8 = arith.constant 1.000000e+00 : f32
    %15 = arith.mulf %14, %cst_8 : f32
    %16 = vector.broadcast %15 : f32 to vector<16x128xf32>
    %17 = arith.subf %13, %16 : vector<16x128xf32>
    %18 = arith.select %8, %11, %17 : vector<16x128xi1>, vector<16x128xf32>
    %c1_i32 = arith.constant 1 : i32
    %19 = arith.muli %arg0, %c1_i32 : i32
    %20 = arith.addi %19, %arg1 : i32
    %c0_i32_9 = arith.constant 0 : i32
    %21 = arith.cmpi sge, %20, %c0_i32_9 : i32
    %true = arith.constant true
    %22 = arith.xori %21, %true : i1
    %23 = arith.extui %22 : i1 to i32
    %c0_i32_10 = arith.constant 0 : i32
    %24 = arith.cmpi ne, %23, %c0_i32_10 : i32
    scf.if %24 {
      %c0_12 = arith.constant 0 : index
      %c0_13 = arith.constant 0 : index
      %c0_14 = arith.constant 0 : index
      %27 = vector.load %arg4[%c0_12, %c0_13, %c0_14] : memref<1x8x128xf32, #tpu.memory_space<vmem>>, vector<1x8x128xf32>
      %28 = vector.shape_cast %18 : vector<16x128xf32> to vector<2x8x128xf32>
      %cst_15 = arith.constant dense<0.000000e+00> : vector<8x128xf32>
      %29 = vector.multi_reduction <add>, %28, %cst_15 [0] : vector<2x8x128xf32> to vector<8x128xf32>
      %30 = vector.shape_cast %29 : vector<8x128xf32> to vector<1x8x128xf32>
      %31 = arith.addf %27, %30 : vector<1x8x128xf32>
      %c0_16 = arith.constant 0 : index
      %c0_17 = arith.constant 0 : index
      %c0_18 = arith.constant 0 : index
      %32 = vector.load %arg4[%c0_16, %c0_17, %c0_18] : memref<1x8x128xf32, #tpu.memory_space<vmem>>, vector<1x8x128xf32>
      tpu.vector_store %arg4[%c0_16, %c0_17, %c0_18], %31 {strides = array<i32>} : memref<1x8x128xf32, #tpu.memory_space<vmem>>, vector<1x8x128xf32>,
    } else {
    }
    %25 = arith.extui %21 : i1 to i32
    %c0_i32_11 = arith.constant 0 : i32
    %26 = arith.cmpi ne, %25, %c0_i32_11 : i32
    scf.if %26 {
      %c16_i32 = arith.constant 16 : i32
      %27 = arith.muli %20, %c16_i32 : i32
      %28 = tpu.iota {dimensions = array<i32: 0>} : vector<16x128xi32>
      %29 = vector.broadcast %27 : i32 to vector<16x128xi32>
      %30 = arith.addi %29, %28 : vector<16x128xi32>
      %31 = tpu.iota {dimensions = array<i32: 1>} : vector<16x128xi32>
      %c15_i32 = arith.constant 15 : i32
      %32 = vector.broadcast %c15_i32 : i32 to vector<16x128xi32>
      %33 = arith.cmpi slt, %30, %32 : vector<16x128xi32>
      %c15_i32_12 = arith.constant 15 : i32
      %34 = vector.broadcast %c15_i32_12 : i32 to vector<16x128xi32>
      %35 = arith.cmpi eq, %30, %34 : vector<16x128xi32>
      %c128_i32 = arith.constant 128 : i32
      %36 = vector.broadcast %c128_i32 : i32 to vector<16x128xi32>
      %37 = arith.cmpi slt, %31, %36 : vector<16x128xi32>
      %38 = arith.andi %35, %37 : vector<16x128xi1>
      %39 = arith.ori %33, %38 : vector<16x128xi1>
      %cst_13 = arith.constant 0.000000e+00 : f32
      %40 = vector.broadcast %cst_13 : f32 to vector<16x128xf32>
      %41 = arith.select %39, %18, %40 : vector<16x128xi1>, vector<16x128xf32>
      %c0_14 = arith.constant 0 : index
      %c0_15 = arith.constant 0 : index
      %c0_16 = arith.constant 0 : index
      %42 = vector.load %arg4[%c0_14, %c0_15, %c0_16] : memref<1x8x128xf32, #tpu.memory_space<vmem>>, vector<1x8x128xf32>
      %43 = vector.shape_cast %41 : vector<16x128xf32> to vector<2x8x128xf32>
      %cst_17 = arith.constant dense<0.000000e+00> : vector<8x128xf32>
      %44 = vector.multi_reduction <add>, %43, %cst_17 [0] : vector<2x8x128xf32> to vector<8x128xf32>
      %45 = vector.shape_cast %44 : vector<8x128xf32> to vector<1x8x128xf32>
      %46 = arith.addf %42, %45 : vector<1x8x128xf32>
      %c0_18 = arith.constant 0 : index
      %c0_19 = arith.constant 0 : index
      %c0_20 = arith.constant 0 : index
      %47 = vector.load %arg4[%c0_18, %c0_19, %c0_20] : memref<1x8x128xf32, #tpu.memory_space<vmem>>, vector<1x8x128xf32>
      tpu.vector_store %arg4[%c0_18, %c0_19, %c0_20], %46 {strides = array<i32>} : memref<1x8x128xf32, #tpu.memory_space<vmem>>, vector<1x8x128xf32>,
    } else {
    }
    return
  }
  func.func @transform_0(%arg0: i32, %arg1: i32) -> (i32, i32) {
    %c1_i32 = arith.constant 1 : i32
    %0 = arith.muli %arg0, %c1_i32 : i32
    %1 = arith.addi %0, %arg1 : i32
    %c0_i32 = arith.constant 0 : i32
    %2 = arith.minsi %1, %c0_i32 : i32
    %c0_i32_0 = arith.constant 0 : i32
    %c0_i32_1 = arith.constant 0 : i32
    return %2, %c0_i32_0 : i32, i32
  }
  func.func @transform_1(%arg0: i32, %arg1: i32) -> (i32, i32) {
    %c1_i32 = arith.constant 1 : i32
    %0 = arith.muli %arg0, %c1_i32 : i32
    %1 = arith.addi %0, %arg1 : i32
    %c0_i32 = arith.constant 0 : i32
    %2 = arith.minsi %1, %c0_i32 : i32
    %c0_i32_0 = arith.constant 0 : i32
    %c0_i32_1 = arith.constant 0 : i32
    return %2, %c0_i32_0 : i32, i32
  }
  func.func @transform_2(%arg0: i32, %arg1: i32) -> (i32, i32, i32) {
    %c0_i32 = arith.constant 0 : i32
    %c0_i32_0 = arith.constant 0 : i32
    %c0_i32_1 = arith.constant 0 : i32
    return %arg0, %c0_i32, %c0_i32_0 : i32, i32, i32
  }
}

</mosaic_0001>

<bundles_post_ra>
// kernel: tpu_custom_call.1
= control target key start
LH: loop header
LB: loop body
LE: loop exit
PB: predicated region body
PF: predicated region fallthrough
CT: control target
= control target key end

     0   :  { %7 = vsyncpa [#allocation3], 0  ;;  %s912_s0 = inlined_call_operand.hbm [shape: f32[16,128], index: 0, kind: input, shape index: {}]   ;;  %s913_s1 = inlined_call_operand.hbm [shape: f32[16,128], index: 1, kind: input, shape index: {}]   ;;  %s914_s2 = inlined_call_operand.hbm [shape: f32[2,8,128], index: 2, kind: output, shape index: {}]  }
   0x1   :  { %9 = vsyncpa [#allocation3 + $0x1], 0 }
   0x2   :  { %10 = vsyncpa [#allocation6], 0 }
   0x3   :  { %12 = vsyncpa [#allocation6 + $0x1], 0 }
   0x4   :  { %13 = vsyncpa [#allocation4], 0 }
   0x5   :  { %15 = vsyncpa [#allocation4 + $0x1], 0  ;;  %s729_s9 = smov 0   ;;  %s731_s10 = smov 0  }
   0x6   :  { %s733_s11 = smov 0   ;;  %s735_s12 = smov 0  }
   0x7   :  { %s737_s13 = smov 0   ;;  %s739_s14 = smov 0  }
   0x8   :  { %s741_s15 = smov 0   ;;  %s743_s16 = smov 0  }
   0x9 LB: > { %s421_s17 = sadd.s32 4294967295, %s707_s16   ;;  %s422_s18 = sadd.s32 4294967294, %s707_s16   ;;  %s707_s16 = sphi %s743_s16, %s21_s16   ;;  %s703_s15 = sphi %s741_s15, %s926_s15   ;;  %s699_s14 = sphi %s739_s14, %s925_s14   ;;  %s695_s13 = sphi %s737_s13, %s902_s13   ;;  %s691_s12 = sphi %s735_s12, %s924_s12   ;;  %s687_s11 = sphi %s733_s11, %s923_s11   ;;  %s683_s10 = sphi %s731_s10, %s922_s10   ;;  %s679_s9 = sphi %s729_s9, %s921_s9  }
   0xa   : > { %s33_s19 = sadd.s32 1, %s703_s15  ;;  %p676_p1 = scmp.ne.s32.totalorder %s695_s13, 0 }
   0xb   : > { %p35_p0 = scmp.ge.s32.totalorder %s33_s19, 2  ;;  %p54_p2 = scmp.eq.s32.totalorder %s707_s16, 0 }
   0xc   : > { %p59_p3 = scmp.ne.s32.totalorder %s695_s13, %s691_s12  ;;  %p60_p5 = scmp.eq.s32.totalorder %s421_s17, 0 }
   0xd   : > { %s928_s19 = smov (%p35_p0, %s33_s19), 0  ;;  %p775_p4 = por %p676_p1, %p54_p2 }
   0xe   : > { %p779_p6 = por %p60_p5, %p59_p3  ;;  %s101_s22 = ssub.s32 %s703_s15, %s928_s19 }
   0xf   : > { %p102_p7 = scmp.eq.s32.totalorder %s101_s22, 0  ;;  %s104_s23 = sadd.s32 1, %s687_s11 }
  0x10   : > { %p114_p8 = scmp.ne.s32.totalorder %s687_s11, %s683_s10  ;;  %p115_p9 = scmp.eq.s32.totalorder %s421_s17, 1 }
  0x11   : > { %s787_s24 = scalar_select %p102_p7, %s687_s11, %s104_s23  }
  0x12   : > { %p120_p10 = scmp.ne.s32.totalorder %s683_s10, %s679_s9  ;;  %p121_p11 = scmp.eq.s32.totalorder %s422_s18, 1 }
  0x13   : > { %p793_p12 = por %p115_p9, %p114_p8  ;;  %p424_p13 = scmp.ge.s32.totalorder %s707_s16, 2 }
  0x14   : > { %p798_p0 = por %p121_p11, %p120_p10  ;;  %p463_p1 = scmp.lt.s32.totalorder %s707_s16, 2 }
  0x15   : > { %s154_s29 = sshll.u32 %s912_s0, 4  ;;  %s709_s30 = smov [#allocation2]   ;;  %s155_s29 = int_to_ptr.hbm [resolvable:$true] %s154_s29 }
  0x16   : > { %s156_s3 = sshll.u32 %s709_s30, 4  ;;  %p808_p2 = pnand %p463_p1, %p775_p4  ;;  %s157_s3 = int_to_ptr.vmem [resolvable:$true] %s156_s3 }
  0x17   : > { %p431_p3 = scmp.ge.s32.totalorder %s707_s16, 1  ;;  %p189_p5 = scmp.lt.s32.totalorder %s707_s16, 3 }
  0x18   : > { %s540_s5 = sshra.s32 %s155_s29, 4  ;;  %p544_p8 = pneg %p808_p2  ;;  %s541_s5 = int_to_ptr.hbm [resolvable:$true] %s540_s5 }
  0x19   : > { %s542_s6 = scalar_lea.hbm %s541_s5, 16  ;;  %s547_s12 = scalar_lea.hbm %s912_s0, 16 }
  0x1a   : > { %p543_p7 = scmp.ne.s32.totalorder %s541_s5, %s542_s6  ;;  %p549_p4 = scmp.lt.s32.totalorder %s547_s12, %s542_s6 }
  0x1c   : > { %p545_p9 = pnand %p544_p8, %p543_p7 }
  0x1e   : > { %p546_p10 = pneg %p545_p9 }
  0x20   : > { %p551_p11 = pnand %p549_p4, %p546_p10 }
  0x22   : > { %554 = shalt.err (!%p551_p11)
}
  0x23   : > { %s710_s17 = smov 128   ;;  %s711_s18 = smov 8  }
  0x24   : > { %455 = dma.hbm_to_vmem [thread:$0]  (!%p808_p2), %s155_s29, 256, %s157_s3, [#allocation3], %s710_s17, %s710_s17, %s711_s18  }
  0x25   : > { %p828_p1 = pnand %p431_p3, %p189_p5  ;;  %s179_s27 = sshll.u32 %s913_s1, 4  ;;  %s180_s27 = int_to_ptr.hbm [resolvable:$true] %s179_s27 }
  0x26   : > { %s712_s28 = smov [#allocation5]   ;;  %s570_s5 = sshra.s32 %s180_s27, 4  ;;  %s571_s5 = int_to_ptr.hbm [resolvable:$true] %s570_s5 }
  0x27   : > { %s181_s30 = sshll.u32 %s712_s28, 4  ;;  %s572_s6 = scalar_lea.hbm %s571_s5, 16  ;;  %s182_s30 = int_to_ptr.vmem [resolvable:$true] %s181_s30 }
  0x28   : > { %p573_p7 = scmp.ne.s32.totalorder %s571_s5, %s572_s6  ;;  %s577_s7 = scalar_lea.hbm %s913_s1, 16 }
  0x29   : > { %p579_p3 = scmp.lt.s32.totalorder %s577_s7, %s572_s6 }
  0x2a   : > { %p575_p9 = pnand %p573_p7, %p544_p8 }
  0x2c   : > { %p576_p10 = pneg %p575_p9 }
  0x2e   : > { %p581_p5 = pnand %p579_p3, %p576_p10 }
  0x30   : > { %584 = shalt.err (!%p581_p5)
}
  0x31   : > { %458 = dma.hbm_to_vmem [thread:$0]  (!%p808_p2), %s180_s27, 256, %s182_s30, [#allocation6], %s710_s17, %s710_s17, %s711_s18  }
  0x32   : > { %193 = sbr.rel (%p828_p1) target bundleno = 111 (0x6f), region = 28  ;;  %s195_s8 = sand.u32 (!%p828_p1), 1, %s695_s13  }
  0x33   : > { %s432_s12 = sshll.u32 (!%p828_p1), %s195_s8, 4  ;;  %s196_s22 = scalar_lea.sflag (!%p828_p1), [#allocation3], %s195_s8 }
  0x34   : > { %s199_s23 = scalar_lea.vmem (!%p828_p1), [#allocation2], %s432_s12 }
  0x37   : > { %665 = dma.done.wait (%p779_p6), %s196_s22, 256  }
  0x38   : > { %667 = vsyncadd (%p779_p6), %s196_s22, 4294967040  ;;  %s206_s28 = scalar_lea.sflag [#allocation6], %s195_s8  ;;  %s209_s5 = scalar_lea.vmem [#allocation5], %s432_s12 }
  0x39   : > { %669 = dma.done.wait (%p779_p6), %s206_s28, 256  }
  0x3a   : > { %671 = vsyncadd (%p779_p6), %s206_s28, 4294967040  ;;  %s233_s4 = sand.u32 1, %s683_s10   ;;  %v713_v0 = vmov 0.0   ;;  %v249_v1 = vld [vmem:[%s209_s5] sm:$0xff]  ;;  %v250_v2 = vld [vmem:[%s209_s5 + $0x8] sm:$0xff]  ;;  %p437_p6 = scmp.ge.s32.totalorder %s699_s14, 0 }
  0x3b   : > { %s434_s17 = sshll.u32 %s233_s4, 3  ;;  %v251_v3 = vld [vmem:[%s199_s23] sm:$0xff]  ;;  %v252_v4 = vld [vmem:[%s199_s23 + $0x8] sm:$0xff] }
  0x3c   : > { %s857_s18 = scalar_lea.vmem [#allocation7], %s434_s17  ;;  %v253_v5 = vsub.f32 %v249_v1, %v251_v3  ;;  %v254_v6 = vsub.f32 %v250_v2, %v252_v4 }
  0x3d   : > { %248 = vst [vmem:[%s857_s18] sm:$0xff] %v713_v0 }
  0x3e   : > { %v255_v7 = vand.u32 2147483647, %v253_v5  ;;  %v259_v8 = vmul.f32 0.5, %v253_v5  ;;  %v256_v9 = vand.u32 2147483647, %v254_v6  ;;  %v260_v10 = vmul.f32 0.5, %v254_v6 }
  0x3f   : > { %272 = sbr.rel (%p437_p6) target bundleno = 73 (0x49), region = 44 }
  0x40   : > { %vm257_vm0 = vcmp.lt.f32.partialorder %v255_v7, 1.0  ;;  %v261_v11 = vmul.f32 %v259_v8, %v253_v5  ;;  %v435_v12 = vadd.f32 -0.5, %v255_v7  ;;  %vm258_vm1 = vcmp.lt.f32.partialorder %v256_v9, 1.0 }
  0x41   : > { %v262_v13 = vmul.f32 %v260_v10, %v254_v6  ;;  %v436_v14 = vadd.f32 -0.5, %v256_v9 }
  0x42   : > { %v265_v15 = vsel %vm257_vm0, %v261_v11, %v435_v12 }
  0x43   : > { %v266_v16 = vsel %vm258_vm1, %v262_v13, %v436_v14 }
  0x44   : > { %v273_v17 = vld [vmem:[%s857_s18] sm:$0xff]  ;;  %v274_v18 = vadd.f32 %v266_v16, %v265_v15 }
  0x46   : > { %v275_v19 = vadd.f32 %v274_v18, %v273_v17 }
  0x48   : > { %276 = vst [vmem:[%s857_s18] sm:$0xff] %v275_v19 }
  0x49 PF: > { %p438_p2 = scmp.lt.s32.totalorder %s699_s14, 0 }
  0x4a   : > { %s439_s21 = sshll.u32 (!%p438_p2), %s699_s14, 4 }
  0x4b   : > { %279 = sbr.rel (%p438_p2) target bundleno = 96 (0x60), region = 48 }
  0x50   : > { %v281_v20 = vlaneseq  ;;  %v284_v21 = vstv %s439_s21  ;;  %v300_v28 = vld [vmem:[%s857_s18] sm:$0xff] }
  0x52   : > { %v282_v22 = vshrl.u32 %v281_v20, 7 }
  0x54   : > { %v283_v23 = vadd.s32 8, %v282_v22  ;;  %v285_v24 = vadd.s32 %v284_v21, %v282_v22 }
  0x56   : > { %v286_v25 = vadd.s32 %v284_v21, %v283_v23  ;;  %vm289_vm2 = vcmp.lt.s32.totalorder %v285_v24, 15  ;;  %vm291_vm3 = vcmp.eq.s32.totalorder %v285_v24, 15 }
  0x57   : > { %vm296_vm4 = vmor %vm289_vm2, %vm291_vm3 }
  0x58   : > { %vm290_vm5 = vcmp.lt.s32.totalorder %v286_v25, 15  ;;  %vm292_vm6 = vcmp.eq.s32.totalorder %v286_v25, 15  ;;  %v298_v26 = vsel %vm296_vm4, %v265_v15, 0.0 }
  0x59   : > { %vm297_vm7 = vmor %vm290_vm5, %vm292_vm6 }
  0x5a   : > { %v299_v27 = vsel %vm297_vm7, %v266_v16, 0.0 }
  0x5b   : > { %v301_v29 = vadd.f32 %v299_v27, %v298_v26 }
  0x5d   : > { %v302_v30 = vadd.f32 %v301_v29, %v300_v28 }
  0x5f   : > { %303 = vst [vmem:[%s857_s18] sm:$0xff] %v302_v30 }
  0x60 PF: > { %s441_s20 = sshll.u32 %s699_s14, 3  ;;  %s317_s29 = sshll.u32 %s857_s18, 4  ;;  %s318_s29 = int_to_ptr.vmem [resolvable:$true] %s317_s29 }
  0x61   : > { %s315_s6 = scalar_lea.hbm %s914_s2, %s441_s20  ;;  %s305_s7 = scalar_lea.sflag [#allocation4], %s233_s4 }
  0x62   : > { %s319_s3 = sshll.u32 %s315_s6, 4  ;;  %s620_s14 = scalar_lea.hbm %s914_s2, 16  ;;  %s320_s3 = int_to_ptr.hbm [resolvable:$true] %s319_s3 }
  0x63   : > { %s614_s8 = sshra.s32 %s320_s3, 4  ;;  %s615_s8 = int_to_ptr.hbm [resolvable:$true] %s614_s8 }
  0x64   : > { %s616_s12 = scalar_lea.hbm %s615_s8, 8  ;;  %p621_p1 = scmp.lt.s32.totalorder %s615_s8, %s914_s2 }
  0x65   : > { %p617_p8 = scmp.ne.s32.totalorder %s615_s8, %s616_s12  ;;  %p622_p7 = scmp.lt.s32.totalorder %s620_s14, %s616_s12 }
  0x67   : > { %p618_p4 = pnand %p617_p8, %p793_p12  ;;  %p623_p9 = por %p622_p7, %p621_p1 }
  0x69   : > { %p619_p11 = pneg %p618_p4 }
  0x6b   : > { %p624_p10 = pnand %p623_p9, %p619_p11 }
  0x6d   : > { %627 = shalt.err (!%p624_p10)
}
  0x6e   : > { %450 = dma.vmem_to_hbm [thread:$0]  (%p793_p12), %s318_s29, 128, %s320_s3, %s305_s7  }
  0x6f PF: > { %s331_s4 = sand.u32 1, %s679_s9   ;;  %p460_p3 = pnand %p424_p13, %p798_p0 }
  0x70   : > { %s332_s17 = scalar_lea.sflag [#allocation4], %s331_s4 }
  0x71   : > { %p461_p5 = pneg %p460_p3 }
  0x73   : > { %673 = dma.done.wait (%p461_p5), %s332_s17, 128  }
  0x74   : > { %675 = vsyncadd (%p461_p5), %s332_s17, 4294967168  ;;  %s21_s16 = sadd.s32 1, %s707_s16   ;;  %s921_s9 = smov %s683_s10 }
  0x75   : > { %p18_p6 = scmp.ge.s32.totalorder %s21_s16, 4   ;;  %s922_s10 = smov %s687_s11 }
  0x76   : > { %s923_s11 = smov %s787_s24  ;;  %s924_s12 = smov %s695_s13 }
  0x77   : > { %s902_s13 = smov 0   ;;  %s925_s14 = smov %s703_s15 }
  0x78   : > { %s926_s15 = smov %s928_s19  ;;  %20 = sbr.rel (!%p18_p6) target bundleno = 9 (0x9), region = 98 }
  0x7d   :  { %338 = vsyncpa [#allocation3], 1 }
  0x7e   :  { %340 = vsyncpa [#allocation3 + $0x1], 1 }
  0x7f   :  { %341 = vsyncpa [#allocation6], 1 }
  0x80   :  { %343 = vsyncpa [#allocation6 + $0x1], 1 }
  0x81   :  { %344 = vsyncpa [#allocation4], 1 }
  0x82   :  { %346 = vsyncpa [#allocation4 + $0x1], 1 }

</bundles_post_ra>
